<compile_context>
chip_gen: v7x
topology: tpu7x:2x2x1
jax: 0.10.0
libtpu: 0.0.40
codegen_flags: <defaults>
</compile_context>

<pallas_src>
import math

import jax
import jax.numpy as jnp
from jax.experimental import pallas as pl
from jax.experimental.pallas import tpu as pltpu


def _double_kernel(x_ref, o_ref):
    # DoubleOutput: pure VPU elementwise y = 2*x on a lane-dense VMEM tile.
    o_ref[...] = x_ref[...] * jnp.asarray(2, dtype=o_ref.dtype)


def _pick_tile(dim, granule, cap):
    """Largest tile <= cap keeping (8,128) divisibility, or the full dim."""
    if dim <= granule:
        return dim                      # full-extent block (always legal)
    tile = min(dim, cap)
    tile -= tile % granule
    return max(tile, granule)


def _target_block_elems(itemsize):
    # ~4 MiB blocks on v6e/v7x (the ~0.35us per-grid-step overhead becomes
    # negligible at 3.2 TB/s); ~2 MiB on v5e where HBM BW is the limiter and
    # bigger blocks only lengthen the exposed first/last pipeline steps.
    try:
        kind = jax.devices()[0].device_kind.lower()
    except Exception:
        kind = ""
    target_bytes = (2 << 20) if "v5" in kind else (4 << 20)
    return max(target_bytes // itemsize, 8 * 128)


def _layer0_forward(x):
    """layer0: Flatten (keep batch dim) then DoubleOutput (y = 2*x)."""
    B = x.shape[0]
    F = math.prod(x.shape[1:])

    # Flatten: collapsing trailing contiguous dims is a bitcast (no relayout
    # copy), and (B, F) is already the lane-dense slab the kernel wants.
    x2 = jnp.reshape(x, (B, F))

    target = _target_block_elems(x2.dtype.itemsize)
    tile_f = _pick_tile(F, 128, 8192)
    tile_b = _pick_tile(B, 8, max(target // tile_f, 8))

    grid_b = pl.cdiv(B, tile_b)
    grid_f = pl.cdiv(F, tile_f)

    # v7x: a single grid step cannot shard across the two TensorCores; split
    # medium single-block inputs in two. Harmless (one extra step) elsewhere.
    if grid_b == 1 and grid_f == 1 and B * F >= 256 * 1024:
        if F % 256 == 0:
            tile_f, grid_f = F // 2, 2
        elif B % 16 == 0:
            tile_b, grid_b = B // 2, 2

    return pl.pallas_call(
        _double_kernel,
        out_shape=jax.ShapeDtypeStruct((B, F), x2.dtype),
        grid_spec=pl.GridSpec(
            grid=(grid_b, grid_f),
            in_specs=[pl.BlockSpec((tile_b, tile_f), lambda i, j: (i, j))],
            out_specs=pl.BlockSpec((tile_b, tile_f), lambda i, j: (i, j)),
        ),
        # In-place update of the donated input slab: 1 HBM read + 1 HBM write,
        # no second output buffer allocation.
        input_output_aliases={0: 0},
        compiler_params=pltpu.CompilerParams(
            dimension_semantics=("parallel", "parallel"),
            vmem_limit_bytes=40 * 1024 * 1024,
        ),
    )(x2)


# jit so the flatten bitcast fuses with the pallas_call and so the donated
# input can legally alias the output (prevents a defensive copy).
layer0_forward = jax.jit(_layer0_forward, donate_argnums=(0,))


if __name__ == "__main__":
    key = jax.random.PRNGKey(0)
    B, C, H, W = 2, 4, 16, 16
    x = jax.random.normal(key, (B, C, H, W), dtype=jnp.float32)

    # Reference computed BEFORE the call because x's buffer is donated.
    y_ref = jnp.reshape(x, (B, C * H * W)) * 2.0
    jax.block_until_ready(y_ref)

    y = layer0_forward(x)
    jax.block_until_ready(y)

    assert y.shape == (B, C * H * W)
    assert jnp.allclose(y, y_ref, atol=1e-6, rtol=1e-6)

    print("KERNEL_OK")
</pallas_src>

<mosaic_0001>
module attributes {stable_mosaic.version = 11 : i64} {
  func.func @_double_kernel(%arg0: i32, %arg1: i32, %arg2: memref<2x1024xf32, #tpu.memory_space<vmem>>, %arg3: memref<2x1024xf32, #tpu.memory_space<vmem>>) attributes {dimension_semantics = [#tpu.dimension_semantics<parallel>, #tpu.dimension_semantics<parallel>], iteration_bounds = array<i64: 1, 1>, scalar_prefetch = 0 : i64, scratch_operands = 0 : i64, tpu.core_type = #tpu.core_type<tc>, window_params = [{transform_indices = @transform_0, window_bounds = array<i64: 2, 1024>}, {transform_indices = @transform_1, window_bounds = array<i64: 2, 1024>}]} {
    %c0 = arith.constant 0 : index
    %c0_0 = arith.constant 0 : index
    %0 = vector.load %arg2[%c0, %c0_0] : memref<2x1024xf32, #tpu.memory_space<vmem>>, vector<2x1024xf32>
    %cst = arith.constant 2.000000e+00 : f32
    %1 = vector.broadcast %cst : f32 to vector<2x1024xf32>
    %2 = arith.mulf %0, %1 : vector<2x1024xf32>
    %c0_1 = arith.constant 0 : index
    %c0_2 = arith.constant 0 : index
    %3 = vector.load %arg3[%c0_1, %c0_2] : memref<2x1024xf32, #tpu.memory_space<vmem>>, vector<2x1024xf32>
    tpu.vector_store %arg3[%c0_1, %c0_2], %2 {strides = array<i32>} : memref<2x1024xf32, #tpu.memory_space<vmem>>, vector<2x1024xf32>,
    return
  }
  func.func @transform_0(%arg0: i32, %arg1: i32) -> (i32, i32) {
    %c0_i32 = arith.constant 0 : i32
    return %arg0, %arg1 : i32, i32
  }
  func.func @transform_1(%arg0: i32, %arg1: i32) -> (i32, i32) {
    %c0_i32 = arith.constant 0 : i32
    return %arg0, %arg1 : i32, i32
  }
}

</mosaic_0001>

<bundles_post_ra>
// kernel: _layer0_forward.1
= control target key start
LH: loop header
LB: loop body
LE: loop exit
PB: predicated region body
PF: predicated region fallthrough
CT: control target
= control target key end

     0   :  { %6 = vsyncpa [#allocation3], 0  ;;  %s128_s0 = inlined_call_operand.hbm [shape: f32[2,1024], index: 0, kind: input, shape index: {}, may-alias: {0,1}]   ;;  %s129_s1 = inlined_call_operand.hbm [shape: f32[2,1024], index: 1, kind: output, shape index: {}, may-alias: {0,1}]  }
   0x1   :  { %7 = vsyncpa [#allocation4], 0  ;;  %s92_s6 = smov [#allocation2]   ;;  %s44_s10 = scalar_lea.hbm %s128_s0, 256 }
   0x2   :  { %s14_s7 = sshll.u32 %s92_s6, 4  ;;  %p45_p0 = scmp.ne.s32.totalorder %s128_s0, %s44_s10  ;;  %s15_s7 = int_to_ptr.vmem [resolvable:$true] %s14_s7 }
   0x3   :  { %p48_p1 = scmp.lt.u32.totalorder %s44_s10, %s128_s0 }
   0x5   :  { %p50_p2 = pnand %p48_p1, %p45_p0 }
   0x7   :  { %53 = shalt.err (!%p50_p2)
}
   0x8   :  { %s54_s15 = scalar_lea.vmem %s15_s7, 256  ;;  %p59_p4 = scmp.lt.s32.totalorder %s15_s7, %s15_s7 }
   0x9   :  { %p55_p3 = scmp.ne.s32.totalorder %s15_s7, %s54_s15  ;;  %p60_p5 = scmp.lt.s32.totalorder %s54_s15, %s54_s15 }
   0xb   :  { %p61_p6 = por %p60_p5, %p59_p4 }
   0xd   :  { %p62_p7 = pnand %p61_p6, %p55_p3 }
   0xf   :  { %65 = shalt.err (!%p62_p7)
}
  0x10   :  { %17 = dma.hbm_to_vmem [thread:$0]  %s128_s0, 256, %s15_s7, [#allocation3]  }
  0x11   :  { %88 = dma.done.wait [#allocation3], 256  }
  0x12   :  { %89 = vsyncadd [#allocation3], 4294967040  ;;  %s93_s18 = smov [#allocation5]   ;;  %v21_v0 = vld [vmem:[#allocation2] sm:$0xff]  ;;  %v22_v1 = vld [vmem:[#allocation2 + $0x8] sm:$0xff] }
  0x13   :  { %s33_s19 = sshll.u32 %s93_s18, 4  ;;  %v23_v2 = vmul.f32 2.0, %v21_v0  ;;  %v24_v3 = vmul.f32 2.0, %v22_v1  ;;  %s34_s19 = int_to_ptr.vmem [resolvable:$true] %s33_s19 }
  0x14   :  { %s66_s20 = scalar_lea.vmem %s34_s19, 256  ;;  %p71_p9 = scmp.lt.s32.totalorder %s34_s19, %s34_s19 }
  0x15   :  { %25 = vst [vmem:[#allocation5] sm:$0xff] %v23_v2  ;;  %26 = vst [vmem:[#allocation5 + $0x8] sm:$0xff] %v24_v3  ;;  %p67_p8 = scmp.ne.s32.totalorder %s34_s19, %s66_s20  ;;  %p72_p10 = scmp.lt.s32.totalorder %s66_s20, %s66_s20 }
  0x17   :  { %p73_p11 = por %p72_p10, %p71_p9 }
  0x19   :  { %p74_p12 = pnand %p73_p11, %p67_p8 }
  0x1b   :  { %77 = shalt.err (!%p74_p12)
}
  0x1c   :  { %s78_s22 = scalar_lea.hbm %s129_s1, 256 }
  0x1d   :  { %p79_p13 = scmp.ne.s32.totalorder %s129_s1, %s78_s22  ;;  %p82_p0 = scmp.lt.u32.totalorder %s78_s22, %s129_s1 }
  0x1f   :  { %p84_p1 = pnand %p82_p0, %p79_p13 }
  0x21   :  { %87 = shalt.err (!%p84_p1)
}
  0x22   :  { %36 = dma.vmem_to_hbm [thread:$0]  %s34_s19, 256, %s129_s1, [#allocation4]  }
  0x23   :  { %90 = dma.done.wait [#allocation4], 256  }
  0x24   :  { %91 = vsyncadd [#allocation4], 4294967040 }
  0x25   :  { %40 = vsyncpa [#allocation3], 1 }
  0x26   :  { %41 = vsyncpa [#allocation4], 1 }

</bundles_post_ra>
